<compile_context>
chip_gen: v7x
topology: tpu7x:2x2x1
jax: 0.10.0
libtpu: 0.0.40
codegen_flags: <defaults>
</compile_context>

<pallas_src>
import functools
import math

import jax
import jax.numpy as jnp
from jax.experimental import pallas as pl
from jax.experimental.pallas import tpu as pltpu


_TARGET_BLOCK_BYTES = 4 << 20      # ~4 MiB per block; in+out double-buffered ~= 4x resident
_SMALL_BUFFERED_BYTES = 256 << 10  # below this, deepen the input pipeline to 3 buffers


def _copy_kernel(x_ref, o_ref):
    # The slice is selected entirely by the input index_map; the kernel body
    # degenerates to a straight VMEM block copy.
    o_ref[...] = x_ref[...]


def _inkernel_slice_kernel(x_ref, o_ref, *, start, end):
    # Last-resort path: x_ref (bn, C, H*W) -> o_ref (bn, end-start, H*W).
    o_ref[...] = x_ref[:, start:end, :]


def _sublane_multiple(itemsize):
    # Sublane packing requirement for the second-to-last block dim (f32: 8,
    # bf16: 16, int8/fp8: 32).
    return max(8, 32 // max(1, int(itemsize)))


def _largest_aligned_divisor(total, align, cap):
    """Largest d with d | total, d % align == 0, d <= cap (None if none)."""
    if align <= 0 or cap < align or total % align != 0:
        return None
    m = total // align
    best = None
    i = 1
    while i * i <= m:
        if m % i == 0:
            for k in (i, m // i):
                d = k * align
                if d <= cap and (best is None or d > best):
                    best = d
        i += 1
    return best


def _largest_divisor(total, cap):
    """Largest d with d | total and d <= cap (always >= 1)."""
    best = 1
    i = 1
    while i * i <= total:
        if total % i == 0:
            for k in (i, total // i):
                if k <= cap and k > best:
                    best = k
        i += 1
    return best


def _vmem_limit_bytes(*block_bytes):
    # Double-buffered blocks + slack for Mosaic internal scratch; never the
    # old fixed 48 MiB (too greedy on v7x's 64 MiB physical VMEM).
    need = 2 * sum(int(b) for b in block_bytes) + (2 << 20)
    return int(min(64 << 20, max(16 << 20, need)))


def _plan_lane_dense(n, off, s, itemsize):
    """Pick (batch_block, lane_block) for the flattened (N, C*H*W) copy."""
    sub = _sublane_multiple(itemsize)
    # lane_blk must be a multiple of 128 dividing BOTH the window length s and
    # the window offset off (so the input block index off//lane_blk is exact).
    g = s if off == 0 else math.gcd(off, s)            # multiple of 128 (gate)
    cap_elems = max(128, _TARGET_BLOCK_BYTES // itemsize)
    lane_blk = _largest_aligned_divisor(g, 128, cap_elems)  # always >= 128 here

    cap_rows = max(1, _TARGET_BLOCK_BYTES // (lane_blk * itemsize))
    if n <= cap_rows:
        bn = n                                          # full dim always legal
    else:
        bn = _largest_aligned_divisor(n, sub, cap_rows)
        if bn is None:
            # Awkward N: shrink the lane block so the whole batch fits per step.
            cap2 = max(128, (2 * _TARGET_BLOCK_BYTES) // (n * itemsize))
            lane_small = _largest_aligned_divisor(g, 128, cap2)
            if (lane_small is not None
                    and n * lane_small * itemsize <= 2 * _TARGET_BLOCK_BYTES):
                lane_blk, bn = lane_small, n
            else:
                return None                             # route to 3-D fallback

    # v7x has 2 TensorCores: don't collapse a non-trivial copy to grid=(1,1).
    if (n // bn) * (s // lane_blk) == 1 and n * s * itemsize >= (1 << 20):
        if n % (2 * sub) == 0:
            bn = n // 2                                 # split batch first
        elif lane_blk % 256 == 0:
            lane_blk //= 2
    return bn, lane_blk


def _slice_lane_dense(x2, off, s):
    """x2: (N, C*H*W); returns (N, s) = flattened x[:, start:end] or None."""
    n = x2.shape[0]
    itemsize = x2.dtype.itemsize
    plan = _plan_lane_dense(n, off, s, itemsize)
    if plan is None:
        return None
    bn, lane_blk = plan
    off_blk = off // lane_blk                           # exact: lane_blk | off
    grid = (n // bn, s // lane_blk)
    block_bytes = bn * lane_blk * itemsize

    in_spec_kwargs = {}
    if block_bytes < _SMALL_BUFFERED_BYTES and grid[1] >= 4:
        # Shape constraints forced small blocks: hide DMA latency with a
        # 3-deep input pipeline (negligible VMEM cost at this block size).
        in_spec_kwargs["pipeline_mode"] = pl.Buffered(3)

    return pl.pallas_call(
        _copy_kernel,
        out_shape=jax.ShapeDtypeStruct((n, s), x2.dtype),
        grid_spec=pltpu.PrefetchScalarGridSpec(
            num_scalar_prefetch=0,
            grid=grid,
            in_specs=[
                # Output block j reads input block (off_blk + j), i.e. the
                # flattened elements [off + j*lane_blk, off + (j+1)*lane_blk).
                pl.BlockSpec((bn, lane_blk),
                             lambda b, j: (b, off_blk + j),
                             **in_spec_kwargs),
            ],
            out_specs=pl.BlockSpec((bn, lane_blk), lambda b, j: (b, j)),
        ),
        compiler_params=pltpu.CompilerParams(
            dimension_semantics=("parallel", "parallel"),
            vmem_limit_bytes=_vmem_limit_bytes(block_bytes, block_bytes),
        ),
    )(x2)


def _slice_fallback(x3, start, end, c_out):
    """x3: (N, C, H*W) for shapes where the flattened window is not 128-aligned."""
    n, c, hw = x3.shape
    itemsize = x3.dtype.itemsize
    sub = _sublane_multiple(itemsize)

    # Preferred: channel slice in the input index_map -> only [start, end)
    # channels are DMAed (no C/c_out read amplification).
    g = c_out if start == 0 else math.gcd(start, c_out)
    cap_c = max(sub, _TARGET_BLOCK_BYTES // max(1, hw * itemsize))
    c_blk = _largest_aligned_divisor(g, sub, cap_c)
    if c_blk is None and g % sub == 0:
        c_blk = sub
    if c_blk is not None:
        bn = _largest_divisor(n, max(1, _TARGET_BLOCK_BYTES // (c_blk * hw * itemsize)))
        block_bytes = bn * c_blk * hw * itemsize
        start_blk = start // c_blk                       # exact: c_blk | start
        return pl.pallas_call(
            _copy_kernel,
            out_shape=jax.ShapeDtypeStruct((n, c_out, hw), x3.dtype),
            grid_spec=pltpu.PrefetchScalarGridSpec(
                num_scalar_prefetch=0,
                grid=(n // bn, c_out // c_blk),
                in_specs=[pl.BlockSpec((bn, c_blk, hw),
                                       lambda b, cb: (b, start_blk + cb, 0))],
                out_specs=pl.BlockSpec((bn, c_blk, hw), lambda b, cb: (b, cb, 0)),
            ),
            compiler_params=pltpu.CompilerParams(
                dimension_semantics=("parallel", "parallel"),
                vmem_limit_bytes=_vmem_limit_bytes(block_bytes, block_bytes),
            ),
        )(x3)

    # Last resort (start/c_out not sublane-blockable): read the full channel
    # slab per block and slice statically in-kernel (over-fetches by C/c_out).
    bn = _largest_divisor(n, max(1, _TARGET_BLOCK_BYTES // (c * hw * itemsize)))
    in_bytes = bn * c * hw * itemsize
    out_bytes = bn * c_out * hw * itemsize
    kernel = functools.partial(_inkernel_slice_kernel, start=start, end=end)
    return pl.pallas_call(
        kernel,
        out_shape=jax.ShapeDtypeStruct((n, c_out, hw), x3.dtype),
        grid_spec=pltpu.PrefetchScalarGridSpec(
            num_scalar_prefetch=0,
            grid=(n // bn,),
            in_specs=[pl.BlockSpec((bn, c, hw), lambda b: (b, 0, 0))],
            out_specs=pl.BlockSpec((bn, c_out, hw), lambda b: (b, 0, 0)),
        ),
        compiler_params=pltpu.CompilerParams(
            dimension_semantics=("parallel",),
            vmem_limit_bytes=_vmem_limit_bytes(in_bytes, out_bytes),
        ),
    )(x3)


def custom_slice(x, start, end):
    """Pallas implementation of CustomSlice(start, end)(x) for NCHW input."""
    N, C, H, W = x.shape
    start = int(start)
    end = int(end)
    assert 0 <= start <= end <= C, "slice bounds must satisfy 0 <= start <= end <= C"
    c_out = end - start

    # Empty slice / empty batch: no kernel launch (Mosaic rejects 0-sized blocks).
    if c_out == 0 or N == 0:
        return jnp.zeros((N, c_out, H, W), dtype=x.dtype)

    hw = H * W
    off = start * hw          # flattened element offset of the channel window
    s = c_out * hw            # flattened length of the channel window

    # Lane-dense fast path: needs only the window offset and length to be
    # 128-aligned (H*W itself need not be).
    if off % 128 == 0 and s % 128 == 0:
        out2 = _slice_lane_dense(x.reshape(N, C * hw), off, s)
        if out2 is not None:
            return out2.reshape(N, c_out, H, W)

    out3 = _slice_fallback(x.reshape(N, C, hw), start, end, c_out)
    return out3.reshape(N, c_out, H, W)


if __name__ == "__main__":
    key = jax.random.PRNGKey(0)
    N, C, H, W = 2, 4, 16, 16
    x = jax.random.normal(key, (N, C, H, W), dtype=jnp.float32)

    start, end = 1, 3  # CustomSlice(start=1, end=3)

    out = jax.block_until_ready(custom_slice(x, start, end))

    ref = x[:, start:end, :, :]
    assert out.shape == (N, end - start, H, W)
    assert out.dtype == x.dtype
    assert jnp.array_equal(out, ref)

    print("KERNEL_OK")
</pallas_src>

<mosaic_0001>
module attributes {stable_mosaic.version = 11 : i64} {
  func.func @_copy_kernel(%arg0: i32, %arg1: i32, %arg2: memref<2x256xf32, #tpu.memory_space<vmem>>, %arg3: memref<2x256xf32, #tpu.memory_space<vmem>>) attributes {dimension_semantics = [#tpu.dimension_semantics<parallel>, #tpu.dimension_semantics<parallel>], iteration_bounds = array<i64: 1, 2>, scalar_prefetch = 0 : i64, scratch_operands = 0 : i64, tpu.core_type = #tpu.core_type<tc>, window_params = [{transform_indices = @transform_0, window_bounds = array<i64: 2, 256>}, {transform_indices = @transform_1, window_bounds = array<i64: 2, 256>}]} {
    %c0 = arith.constant 0 : index
    %c0_0 = arith.constant 0 : index
    %0 = vector.load %arg2[%c0, %c0_0] : memref<2x256xf32, #tpu.memory_space<vmem>>, vector<2x256xf32>
    %c0_1 = arith.constant 0 : index
    %c0_2 = arith.constant 0 : index
    %1 = vector.load %arg3[%c0_1, %c0_2] : memref<2x256xf32, #tpu.memory_space<vmem>>, vector<2x256xf32>
    tpu.vector_store %arg3[%c0_1, %c0_2], %0 {strides = array<i32>} : memref<2x256xf32, #tpu.memory_space<vmem>>, vector<2x256xf32>,
    return
  }
  func.func @transform_0(%arg0: i32, %arg1: i32) -> (i32, i32) {
    %c1_i32 = arith.constant 1 : i32
    %0 = arith.addi %c1_i32, %arg1 : i32
    %c0_i32 = arith.constant 0 : i32
    return %arg0, %0 : i32, i32
  }
  func.func @transform_1(%arg0: i32, %arg1: i32) -> (i32, i32) {
    %c0_i32 = arith.constant 0 : i32
    return %arg0, %arg1 : i32, i32
  }
}

</mosaic_0001>

<bundles_post_ra>
// kernel: tpu_custom_call.1
= control target key start
LH: loop header
LB: loop body
LE: loop exit
PB: predicated region body
PF: predicated region fallthrough
CT: control target
= control target key end

     0   :  { %6 = vsyncpa [#allocation3], 0  ;;  %s712_s0 = inlined_call_operand.hbm [shape: f32[2,1024], index: 0, kind: input, shape index: {}]   ;;  %s713_s1 = inlined_call_operand.hbm [shape: f32[2,512], index: 1, kind: output, shape index: {}]  }
   0x1   :  { %8 = vsyncpa [#allocation3 + $0x1], 0 }
   0x2   :  { %9 = vsyncpa [#allocation4], 0 }
   0x3   :  { %11 = vsyncpa [#allocation4 + $0x1], 0  ;;  %s515_s6 = smov 0   ;;  %s517_s7 = smov 0  }
   0x4   :  { %s519_s8 = smov 0   ;;  %s521_s9 = smov 0  }
   0x5   :  { %s523_s10 = smov 0   ;;  %s525_s11 = smov 0  }
   0x6   :  { %s527_s12 = smov 0   ;;  %s529_s13 = smov 0  }
   0x7   :  { %s531_s14 = smov 0  }
   0x8 LB: > { %s261_s15 = sadd.s32 4294967295, %s501_s14   ;;  %s262_s16 = sadd.s32 4294967294, %s501_s14   ;;  %s501_s14 = sphi %s531_s14, %s17_s14   ;;  %s497_s13 = sphi %s529_s13, %s732_s13   ;;  %s493_s12 = sphi %s527_s12, %s731_s12   ;;  %s489_s11 = sphi %s525_s11, %s730_s11   ;;  %s485_s10 = sphi %s523_s10, %s729_s10   ;;  %s481_s9 = sphi %s521_s9, %s728_s9   ;;  %s477_s8 = sphi %s519_s8, %s727_s8   ;;  %s473_s7 = sphi %s517_s7, %s726_s7   ;;  %s469_s6 = sphi %s515_s6, %s725_s6  }
   0x9   : > { %s26_s17 = sadd.s32 1, %s497_s13  ;;  %s40_s18 = sadd.s32 1, %s489_s11 }
   0xa   : > { %p27_p0 = scmp.ge.s32.totalorder %s26_s17, 2  ;;  %p47_p1 = scmp.ne.s32.totalorder %s489_s11, %s485_s10 }
   0xb   : > { %p48_p2 = scmp.eq.s32.totalorder %s501_s14, 0  ;;  %p53_p3 = scmp.ne.s32.totalorder %s485_s10, %s481_s9 }
   0xc   : > { %s566_s19 = scalar_select %p27_p0, 0, %s26_s17  }
   0xd   : > { %p568_p4 = por %p48_p2, %p47_p1  ;;  %p54_p5 = scmp.eq.s32.totalorder %s261_s15, 0 }
   0xe   : > { %s34_s21 = sadd.s32 1, %s566_s19  ;;  %s64_s22 = ssub.s32 %s497_s13, %s566_s19 }
   0xf   : > { %s36_s23 = ssub.s32 %s26_s17, %s34_s21  ;;  %p575_p6 = por %p54_p5, %p53_p3 }
  0x10   : > { %p38_p7 = scmp.eq.s32.totalorder %s36_s23, 0  ;;  %p66_p8 = scmp.eq.s32.totalorder %s64_s22, 0 }
  0x11   : > { %s68_s25 = sadd.s32 1, %s477_s8  ;;  %p78_p9 = scmp.ne.s32.totalorder %s477_s8, %s473_s7 }
  0x12   : > { %s583_s26 = scalar_select %p38_p7, %s489_s11, %s40_s18  }
  0x13   : > { %s586_s27 = scalar_select %p66_p8, %s477_s8, %s68_s25  }
  0x14   : > { %p79_p10 = scmp.eq.s32.totalorder %s261_s15, 1  ;;  %p84_p11 = scmp.ne.s32.totalorder %s473_s7, %s469_s6 }
  0x15   : > { %p85_p12 = scmp.eq.s32.totalorder %s262_s16, 1  ;;  %p290_p1 = scmp.lt.s32.totalorder %s501_s14, 2 }
  0x16   : > { %p591_p0 = por %p79_p10, %p78_p9  ;;  %s105_s30 = sand.u32 1, %s489_s11  }
  0x17   : > { %p596_p2 = por %p85_p12, %p84_p11  ;;  %s265_s2 = sshll.u32 %s105_s30, 2 }
  0x18   : > { %s717_s28 = scalar_select %p591_p0, 1, 0 }
  0x19   : > { %s718_s29 = scalar_select %p596_p2, 1, 0 }
  0x1a   : > { %s276_s3 = sshll.u32 %s497_s13, 6  ;;  %s109_s15 = scalar_lea.vmem [#allocation2], %s265_s2 }
  0x1b   : > { %s207_s9 = scalar_lea.hbm %s712_s0, %s276_s3  ;;  %s120_s17 = sshll.u32 %s109_s15, 4  ;;  %s607_s17 = int_to_ptr.vmem [resolvable:$true] %s120_s17 }
  0x1c   : > { %s605_s16 = scalar_lea.hbm %s207_s9, 64  ;;  %p611_p3 = pnand %p290_p1, %p568_p4 }
  0x1d   : > { %s106_s21 = scalar_lea.sflag [#allocation3], %s105_s30  ;;  %s394_s22 = scalar_lea.hbm %s207_s9, 128 }
  0x1e   : > { %p365_p8 = scmp.ne.s32.totalorder %s605_s16, %s394_s22  ;;  %p366_p9 = pneg %p611_p3 }
  0x1f   : > { %s369_s20 = scalar_lea.hbm %s712_s0, 256  ;;  %p370_p4 = scmp.lt.u32.totalorder %s605_s16, %s712_s0 }
  0x20   : > { %p367_p10 = pnand %p366_p9, %p365_p8  ;;  %p371_p12 = scmp.lt.u32.totalorder %s369_s20, %s394_s22 }
  0x21   : > { %p373_p13 = scmp.lt.u32.totalorder %s394_s22, %s605_s16 }
  0x22   : > { %p368_p11 = pneg %p367_p10  ;;  %p372_p1 = por %p371_p12, %p370_p4 }
  0x24   : > { %p374_p5 = por %p373_p13, %p372_p1 }
  0x26   : > { %p375_p7 = pnand %p374_p5, %p368_p11 }
  0x28   : > { %378 = shalt.err (!%p375_p7)
}
  0x29   : > { %s379_s30 = scalar_lea.vmem %s607_s17, 64  ;;  %s503_s4 = smov [#allocation2]  }
  0x2a   : > { %p380_p8 = scmp.ne.s32.totalorder %s607_s17, %s379_s30  ;;  %s384_s5 = sshll.u32 %s503_s4, 4  ;;  %s385_s5 = int_to_ptr.vmem [resolvable:$false] %s384_s5 }
  0x2b   : > { %s386_s9 = scalar_lea.vmem %s385_s5, 128  ;;  %p387_p0 = scmp.lt.s32.totalorder %s607_s17, %s385_s5 }
  0x2c   : > { %p382_p10 = pnand %p380_p8, %p366_p9  ;;  %p388_p4 = scmp.lt.s32.totalorder %s386_s9, %s379_s30 }
  0x2e   : > { %p383_p2 = pneg %p382_p10  ;;  %p389_p12 = por %p388_p4, %p387_p0 }
  0x30   : > { %p390_p13 = pnand %p389_p12, %p383_p2 }
  0x32   : > { %393 = shalt.err (!%p390_p13)
}
  0x33   : > { %285 = dma.hbm_to_vmem [thread:$0]  (!%p611_p3), %s605_s16, 64, %s607_s17, %s106_s21  }
  0x34   : > { %p720_p5 = scmp.lt.s32.totalorder %s501_s14, 3  ;;  %p721_p7 = scmp.ge.s32.totalorder %s501_s14, 1 }
  0x36   : > { %p126_p9 = pnand %p721_p7, %p720_p5 }
  0x37   : > { %s131_s15 = sand.u32 (!%p126_p9), 1, %s485_s10  }
  0x38   : > { %129 = sbr.rel (%p126_p9) target bundleno = 90 (0x5a), region = 24  ;;  %s269_s22 = sshll.u32 (!%p126_p9), %s131_s15, 2 }
  0x39   : > { %s132_s23 = scalar_lea.sflag (!%p126_p9), [#allocation3], %s131_s15  ;;  %s135_s25 = scalar_lea.vmem (!%p126_p9), [#allocation2], %s269_s22 }
  0x3f   : > { %460 = dma.done.wait (%p575_p6), %s132_s23, 64  }
  0x40   : > { %462 = vsyncadd (%p575_p6), %s132_s23, 4294967232  ;;  %s151_s18 = sand.u32 1, %s473_s7   ;;  %s277_s20 = sshll.u32 %s493_s12, 6  ;;  %v157_v0 = vld [vmem:[%s135_s25] sm:$0xf] }
  0x41   : > { %s270_s17 = sshll.u32 %s151_s18, 2  ;;  %s657_s30 = scalar_lea.hbm %s713_s1, %s277_s20 }
  0x42   : > { %s153_s16 = scalar_lea.vmem [#allocation5], %s270_s17  ;;  %s160_s24 = scalar_lea.sflag [#allocation4], %s151_s18 }
  0x43   : > { %s176_s21 = sshll.u32 %s153_s16, 4  ;;  %158 = vst [vmem:[%s153_s16] sm:$0xf] %v157_v0  ;;  %p722_p0 = scmp.ne.s32.totalorder %s717_s28, 0  ;;  %s652_s21 = int_to_ptr.vmem [resolvable:$true] %s176_s21 }
  0x44   : > { %s395_s4 = scalar_lea.vmem %s652_s21, 64  ;;  %s504_s5 = smov [#allocation5]  }
  0x45   : > { %p396_p6 = scmp.ne.s32.totalorder %s652_s21, %s395_s4  ;;  %s399_s12 = sshll.u32 %s504_s5, 4  ;;  %s400_s12 = int_to_ptr.vmem [resolvable:$false] %s399_s12 }
  0x46   : > { %s401_s9 = scalar_lea.vmem %s400_s12, 128  ;;  %p402_p11 = scmp.lt.s32.totalorder %s652_s21, %s400_s12 }
  0x47   : > { %p397_p2 = pnand %p396_p6, %p722_p0  ;;  %p403_p1 = scmp.lt.s32.totalorder %s401_s9, %s395_s4 }
  0x49   : > { %p398_p3 = pneg %p397_p2  ;;  %p404_p8 = por %p403_p1, %p402_p11 }
  0x4b   : > { %p405_p10 = pnand %p404_p8, %p398_p3 }
  0x4d   : > { %408 = shalt.err (!%p405_p10)
}
  0x4e   : > { %s409_s15 = scalar_lea.hbm %s657_s30, 64  ;;  %s413_s25 = scalar_lea.hbm %s713_s1, 128 }
  0x4f   : > { %p410_p4 = scmp.ne.s32.totalorder %s657_s30, %s409_s15  ;;  %p414_p5 = scmp.lt.u32.totalorder %s657_s30, %s713_s1 }
  0x50   : > { %p415_p7 = scmp.lt.u32.totalorder %s413_s25, %s409_s15  ;;  %p417_p6 = scmp.lt.u32.totalorder %s409_s15, %s657_s30 }
  0x51   : > { %p411_p12 = pnand %p410_p4, %p722_p0 }
  0x52   : > { %p416_p9 = por %p415_p7, %p414_p5 }
  0x53   : > { %p412_p13 = pneg %p411_p12 }
  0x54   : > { %p418_p2 = por %p417_p6, %p416_p9 }
  0x56   : > { %p419_p3 = pnand %p418_p2, %p412_p13 }
  0x58   : > { %422 = shalt.err (!%p419_p3)
}
  0x59   : > { %280 = dma.vmem_to_hbm [thread:$0]  (%p722_p0), %s652_s21, 64, %s657_s30, %s160_s24  }
  0x5a PF: > { %s188_s16 = sand.u32 1, %s469_s6   ;;  %p723_p11 = scmp.ne.s32.totalorder %s718_s29, 0 }
  0x5b   : > { %p724_p1 = scmp.ge.s32.totalorder %s501_s14, 2  ;;  %s189_s20 = scalar_lea.sflag [#allocation4], %s188_s16 }
  0x5d   : > { %p287_p8 = pnand %p724_p1, %p723_p11 }
  0x5f   : > { %464 = dma.done.wait (!%p287_p8), %s189_s20, 64  }
  0x60   : > { %466 = vsyncadd (!%p287_p8), %s189_s20, 4294967232  ;;  %s17_s14 = sadd.s32 1, %s501_s14   ;;  %s725_s6 = smov %s473_s7 }
  0x61   : > { %p14_p10 = scmp.ge.s32.totalorder %s17_s14, 4   ;;  %s726_s7 = smov %s477_s8 }
  0x62   : > { %s727_s8 = smov %s586_s27  ;;  %s728_s9 = smov %s485_s10 }
  0x63   : > { %s729_s10 = smov %s489_s11  ;;  %s730_s11 = smov %s583_s26 }
  0x64   : > { %s731_s12 = smov %s497_s13  ;;  %s732_s13 = smov %s566_s19 }
  0x65   :  { %16 = sbr.rel (!%p14_p10) target bundleno = 8 (0x8), region = 69 }
  0x6c   :  { %194 = vsyncpa [#allocation3], 1 }
  0x6d   :  { %196 = vsyncpa [#allocation3 + $0x1], 1 }
  0x6e   :  { %197 = vsyncpa [#allocation4], 1 }
  0x6f   :  { %199 = vsyncpa [#allocation4 + $0x1], 1 }

</bundles_post_ra>
